<compile_context>
chip_gen: v6e
topology: v6e:2x2x1
jax: 0.10.0
libtpu: 0.0.40
codegen_flags: <defaults>
</compile_context>

<pallas_src>
import functools

import jax
import jax.numpy as jnp
from jax.experimental import pallas as pl
from jax.experimental.pallas import tpu as pltpu


# ----------------------------------------------------------------------------
# Kernels
# ----------------------------------------------------------------------------
def _gru_kernel(z_ref, a_ref,
                wz_ru_ref, wa_ru_ref, b_ru_ref,
                wz_c_ref, wa_c_ref, b_c_ref,
                o_ref, *, latent):
    z = z_ref[...]                                   # [R, L]
    a = a_ref[...]                                   # [R, A]

    # reset & update gates in one [R, 2L] matmul (lane-dense output).
    gates = jnp.dot(z, wz_ru_ref[...], preferred_element_type=jnp.float32)
    gates = gates + jnp.dot(a, wa_ru_ref[...], preferred_element_type=jnp.float32)
    gates = jax.nn.sigmoid(gates + b_ru_ref[...])
    reset = gates[:, :latent]
    update = gates[:, latent:]

    cand = jnp.dot(reset * z, wz_c_ref[...], preferred_element_type=jnp.float32)
    cand = cand + jnp.dot(a, wa_c_ref[...], preferred_element_type=jnp.float32)
    cand = jnp.tanh(cand + b_c_ref[...])

    o_ref[...] = update * z + (1.0 - update) * cand


def _gru_topdown_kernel(z_ref, a_ref, t_ref,
                        wz_ru_ref, wa_ru_ref, b_ru_ref,
                        wz_c_ref, wa_c_ref, b_c_ref,
                        wt_ru2_ref, wz_ru2_ref, b_ru2_ref,
                        wt_c2_ref, wz_c2_ref, b_c2_ref,
                        o_ref, *, latent):
    z = z_ref[...]
    a = a_ref[...]
    t = t_ref[...]

    # ---- base path: gates over cat([prev_z, action]) ----
    gates = jnp.dot(z, wz_ru_ref[...], preferred_element_type=jnp.float32)
    gates = gates + jnp.dot(a, wa_ru_ref[...], preferred_element_type=jnp.float32)
    gates = jax.nn.sigmoid(gates + b_ru_ref[...])
    reset = gates[:, :latent]
    update = gates[:, latent:]

    cand = jnp.dot(reset * z, wz_c_ref[...], preferred_element_type=jnp.float32)
    cand = cand + jnp.dot(a, wa_c_ref[...], preferred_element_type=jnp.float32)
    cand = jnp.tanh(cand + b_c_ref[...])
    h = update * z + (1.0 - update) * cand

    # ---- topdown path: gates over cat([topdown, prev_z]) ----
    gates2 = jnp.dot(t, wt_ru2_ref[...], preferred_element_type=jnp.float32)
    gates2 = gates2 + jnp.dot(z, wz_ru2_ref[...], preferred_element_type=jnp.float32)
    gates2 = jax.nn.sigmoid(gates2 + b_ru2_ref[...])
    reset2 = gates2[:, :latent]
    update2 = gates2[:, latent:]

    cand2 = jnp.dot(reset2 * t, wt_c2_ref[...], preferred_element_type=jnp.float32)
    cand2 = cand2 + jnp.dot(z, wz_c2_ref[...], preferred_element_type=jnp.float32)
    cand2 = jnp.tanh(cand2 + b_c2_ref[...])
    h2 = update2 * t + (1.0 - update2) * cand2

    o_ref[...] = 0.5 * (h + h2)


# ----------------------------------------------------------------------------
# Wrapper
# ----------------------------------------------------------------------------
def _pick_row_tile(b):
    for t in (512, 256, 128, 64, 32, 16, 8):
        if b % t == 0:
            return t
    return b  # small / ragged batch: one full-extent block (always legal)


def gru_cell_forward(params, action, prev_z, topdown=None):
    b, latent = prev_z.shape
    adim = action.shape[1]
    assert action.shape[0] == b

    row_tile = _pick_row_tile(b)
    grid = (b // row_tile,)

    def rows(ncols):
        return pl.BlockSpec((row_tile, ncols), lambda i: (i, 0))

    def whole(arr):
        return pl.BlockSpec(arr.shape, lambda i: (0, 0))

    prev_z = prev_z.astype(jnp.float32)
    action = action.astype(jnp.float32)

    base_w = (params["wz_ru"], params["wa_ru"], params["b_ru"],
              params["wz_c"], params["wa_c"], params["b_c"])

    if topdown is None:
        kernel = functools.partial(_gru_kernel, latent=latent)
        operands = (prev_z, action) + base_w
        in_specs = [rows(latent), rows(adim)] + [whole(w) for w in base_w]
    else:
        topdown = topdown.astype(jnp.float32)
        top_w = (params["wt_ru2"], params["wz_ru2"], params["b_ru2"],
                 params["wt_c2"], params["wz_c2"], params["b_c2"])
        kernel = functools.partial(_gru_topdown_kernel, latent=latent)
        operands = (prev_z, action, topdown) + base_w + top_w
        in_specs = ([rows(latent), rows(adim), rows(latent)]
                    + [whole(w) for w in base_w + top_w])

    return pl.pallas_call(
        kernel,
        out_shape=jax.ShapeDtypeStruct((b, latent), jnp.float32),
        grid=grid,
        in_specs=in_specs,
        out_specs=rows(latent),
        compiler_params=pltpu.CompilerParams(
            dimension_semantics=("parallel",)),
    )(*operands)


# ----------------------------------------------------------------------------
# Parameters (torch nn.Linear-style init, pre-split/pre-packed for the kernel)
# ----------------------------------------------------------------------------
def init_gru_params(key, latent, adim):
    def linear(k, fan_in, fan_out):
        kw, kb = jax.random.split(k)
        s = 1.0 / float(fan_in) ** 0.5
        w = jax.random.uniform(kw, (fan_out, fan_in), jnp.float32, -s, s)
        bias = jax.random.uniform(kb, (fan_out,), jnp.float32, -s, s)
        return w, bias

    keys = jax.random.split(key, 6)
    w_r, b_r = linear(keys[0], latent + adim, latent)    # reset_gate
    w_u, b_u = linear(keys[1], latent + adim, latent)    # update_gate
    w_c, b_c = linear(keys[2], latent + adim, latent)    # candidate_mm
    w_r2, b_r2 = linear(keys[3], 2 * latent, latent)     # reset_connected
    w_u2, b_u2 = linear(keys[4], 2 * latent, latent)     # update_connected
    w_c2, b_c2 = linear(keys[5], 2 * latent, latent)     # candidate_connected_mm

    p = {}
    # Base path: input = cat([prev_z, action]); split weight rows, pack
    # reset & update along the output (lane) dim -> one [.., 2L] matmul.
    wr, wu, wc = w_r.T, w_u.T, w_c.T                     # [in, out]
    p["wz_ru"] = jnp.concatenate([wr[:latent], wu[:latent]], axis=1)   # [L, 2L]
    p["wa_ru"] = jnp.concatenate([wr[latent:], wu[latent:]], axis=1)   # [A, 2L]
    p["b_ru"] = jnp.concatenate([b_r, b_u]).reshape(1, 2 * latent)
    p["wz_c"] = wc[:latent]                                            # [L, L]
    p["wa_c"] = wc[latent:]                                            # [A, L]
    p["b_c"] = b_c.reshape(1, latent)

    # Topdown path: input = cat([topdown, prev_z]).
    wr2, wu2, wc2 = w_r2.T, w_u2.T, w_c2.T
    p["wt_ru2"] = jnp.concatenate([wr2[:latent], wu2[:latent]], axis=1)  # [L, 2L]
    p["wz_ru2"] = jnp.concatenate([wr2[latent:], wu2[latent:]], axis=1)  # [L, 2L]
    p["b_ru2"] = jnp.concatenate([b_r2, b_u2]).reshape(1, 2 * latent)
    p["wt_c2"] = wc2[:latent]
    p["wz_c2"] = wc2[latent:]
    p["b_c2"] = b_c2.reshape(1, latent)
    return p


# ----------------------------------------------------------------------------
if __name__ == "__main__":
    key = jax.random.PRNGKey(0)
    k_param, k_act, k_z, k_top = jax.random.split(key, 4)

    B = 2
    latent = 32
    action_dim = 6

    params = init_gru_params(k_param, latent, action_dim)

    action = jax.random.uniform(k_act, (B, action_dim), jnp.float32, -1.0, 1.0)
    prev_z = jax.random.normal(k_z, (B, latent), jnp.float32)
    topdown = jax.random.normal(k_top, (B, latent), jnp.float32)

    fwd = jax.jit(gru_cell_forward, static_argnames=())

    h = fwd(params, action, prev_z)                       # topdown=None path
    h_td = jax.jit(gru_cell_forward)(params, action, prev_z, topdown)
    jax.block_until_ready((h, h_td))

    assert h.shape == (B, latent) and h.dtype == jnp.float32
    assert h_td.shape == (B, latent) and h_td.dtype == jnp.float32
    assert bool(jnp.all(jnp.isfinite(h))) and bool(jnp.all(jnp.isfinite(h_td)))
    print("KERNEL_OK")
</pallas_src>

<mosaic_0001>
module attributes {stable_mosaic.version = 11 : i64} {
  func.func @_gru_kernel(%arg0: i32, %arg1: memref<2x32xf32, #tpu.memory_space<vmem>>, %arg2: memref<2x6xf32, #tpu.memory_space<vmem>>, %arg3: memref<32x64xf32, #tpu.memory_space<vmem>>, %arg4: memref<6x64xf32, #tpu.memory_space<vmem>>, %arg5: memref<1x64xf32, #tpu.memory_space<vmem>>, %arg6: memref<32x32xf32, #tpu.memory_space<vmem>>, %arg7: memref<6x32xf32, #tpu.memory_space<vmem>>, %arg8: memref<1x32xf32, #tpu.memory_space<vmem>>, %arg9: memref<2x32xf32, #tpu.memory_space<vmem>>) attributes {dimension_semantics = [#tpu.dimension_semantics<parallel>], iteration_bounds = array<i64: 1>, scalar_prefetch = 0 : i64, scratch_operands = 0 : i64, tpu.core_type = #tpu.core_type<tc>, window_params = [{transform_indices = @transform_0, window_bounds = array<i64: 2, 32>}, {transform_indices = @transform_1, window_bounds = array<i64: 2, 6>}, {pipeline_mode = #tpu.pipeline_mode<synchronous>, transform_indices = @transform_2, window_bounds = array<i64: 32, 64>}, {pipeline_mode = #tpu.pipeline_mode<synchronous>, transform_indices = @transform_3, window_bounds = array<i64: 6, 64>}, {pipeline_mode = #tpu.pipeline_mode<synchronous>, transform_indices = @transform_4, window_bounds = array<i64: 1, 64>}, {pipeline_mode = #tpu.pipeline_mode<synchronous>, transform_indices = @transform_5, window_bounds = array<i64: 32, 32>}, {pipeline_mode = #tpu.pipeline_mode<synchronous>, transform_indices = @transform_6, window_bounds = array<i64: 6, 32>}, {pipeline_mode = #tpu.pipeline_mode<synchronous>, transform_indices = @transform_7, window_bounds = array<i64: 1, 32>}, {transform_indices = @transform_8, window_bounds = array<i64: 2, 32>}]} {
    %c0 = arith.constant 0 : index
    %c0_0 = arith.constant 0 : index
    %0 = vector.load %arg1[%c0, %c0_0] : memref<2x32xf32, #tpu.memory_space<vmem>>, vector<2x32xf32>
    %c0_1 = arith.constant 0 : index
    %c0_2 = arith.constant 0 : index
    %1 = vector.load %arg2[%c0_1, %c0_2] : memref<2x6xf32, #tpu.memory_space<vmem>>, vector<2x6xf32>
    %c0_3 = arith.constant 0 : index
    %c0_4 = arith.constant 0 : index
    %2 = vector.load %arg3[%c0_3, %c0_4] : memref<32x64xf32, #tpu.memory_space<vmem>>, vector<32x64xf32>
    %cst = arith.constant dense<0.000000e+00> : vector<2x64xf32>
    %3 = tpu.matmul %0, %2, %cst {dimension_numbers = #tpu.dot_dimension_numbers<[1], [0], [0], [1], [0, 0, 1, 1], [], []>} : vector<2x32xf32>, vector<32x64xf32>, vector<2x64xf32> -> vector<2x64xf32>
    %c0_5 = arith.constant 0 : index
    %c0_6 = arith.constant 0 : index
    %4 = vector.load %arg4[%c0_5, %c0_6] : memref<6x64xf32, #tpu.memory_space<vmem>>, vector<6x64xf32>
    %cst_7 = arith.constant dense<0.000000e+00> : vector<2x64xf32>
    %5 = tpu.matmul %1, %4, %cst_7 {dimension_numbers = #tpu.dot_dimension_numbers<[1], [0], [0], [1], [0, 0, 1, 1], [], []>} : vector<2x6xf32>, vector<6x64xf32>, vector<2x64xf32> -> vector<2x64xf32>
    %6 = arith.addf %3, %5 : vector<2x64xf32>
    %c0_8 = arith.constant 0 : index
    %c0_9 = arith.constant 0 : index
    %7 = vector.load %arg5[%c0_8, %c0_9] : memref<1x64xf32, #tpu.memory_space<vmem>>, vector<1x64xf32>
    %8 = vector.broadcast %7 : vector<1x64xf32> to vector<2x64xf32>
    %9 = arith.addf %6, %8 : vector<2x64xf32>
    %10 = arith.negf %9 : vector<2x64xf32>
    %11 = math.exp %10 : vector<2x64xf32>
    %cst_10 = arith.constant 1.000000e+00 : f32
    %12 = vector.broadcast %cst_10 : f32 to vector<2x64xf32>
    %13 = arith.addf %12, %11 : vector<2x64xf32>
    %14 = arith.divf %12, %13 : vector<2x64xf32>
    %15 = vector.extract_strided_slice %14 {offsets = [0, 0], sizes = [2, 32], strides = [1, 1]} : vector<2x64xf32> to vector<2x32xf32>
    %16 = vector.extract_strided_slice %14 {offsets = [0, 32], sizes = [2, 32], strides = [1, 1]} : vector<2x64xf32> to vector<2x32xf32>
    %17 = arith.mulf %15, %0 : vector<2x32xf32>
    %c0_11 = arith.constant 0 : index
    %c0_12 = arith.constant 0 : index
    %18 = vector.load %arg6[%c0_11, %c0_12] : memref<32x32xf32, #tpu.memory_space<vmem>>, vector<32x32xf32>
    %cst_13 = arith.constant dense<0.000000e+00> : vector<2x32xf32>
    %19 = tpu.matmul %17, %18, %cst_13 {dimension_numbers = #tpu.dot_dimension_numbers<[1], [0], [0], [1], [0, 0, 1, 1], [], []>} : vector<2x32xf32>, vector<32x32xf32>, vector<2x32xf32> -> vector<2x32xf32>
    %c0_14 = arith.constant 0 : index
    %c0_15 = arith.constant 0 : index
    %20 = vector.load %arg7[%c0_14, %c0_15] : memref<6x32xf32, #tpu.memory_space<vmem>>, vector<6x32xf32>
    %cst_16 = arith.constant dense<0.000000e+00> : vector<2x32xf32>
    %21 = tpu.matmul %1, %20, %cst_16 {dimension_numbers = #tpu.dot_dimension_numbers<[1], [0], [0], [1], [0, 0, 1, 1], [], []>} : vector<2x6xf32>, vector<6x32xf32>, vector<2x32xf32> -> vector<2x32xf32>
    %22 = arith.addf %19, %21 : vector<2x32xf32>
    %c0_17 = arith.constant 0 : index
    %c0_18 = arith.constant 0 : index
    %23 = vector.load %arg8[%c0_17, %c0_18] : memref<1x32xf32, #tpu.memory_space<vmem>>, vector<1x32xf32>
    %24 = vector.broadcast %23 : vector<1x32xf32> to vector<2x32xf32>
    %25 = arith.addf %22, %24 : vector<2x32xf32>
    %26 = math.tanh %25 : vector<2x32xf32>
    %27 = arith.mulf %16, %0 : vector<2x32xf32>
    %cst_19 = arith.constant 1.000000e+00 : f32
    %28 = vector.broadcast %cst_19 : f32 to vector<2x32xf32>
    %29 = arith.subf %28, %16 : vector<2x32xf32>
    %30 = arith.mulf %29, %26 : vector<2x32xf32>
    %31 = arith.addf %27, %30 : vector<2x32xf32>
    %c0_20 = arith.constant 0 : index
    %c0_21 = arith.constant 0 : index
    %32 = vector.load %arg9[%c0_20, %c0_21] : memref<2x32xf32, #tpu.memory_space<vmem>>, vector<2x32xf32>
    tpu.vector_store %arg9[%c0_20, %c0_21], %31 {strides = array<i32>} : memref<2x32xf32, #tpu.memory_space<vmem>>, vector<2x32xf32>,
    return
  }
  func.func @transform_0(%arg0: i32) -> (i32, i32) {
    %c0_i32 = arith.constant 0 : i32
    %c0_i32_0 = arith.constant 0 : i32
    return %arg0, %c0_i32 : i32, i32
  }
  func.func @transform_1(%arg0: i32) -> (i32, i32) {
    %c0_i32 = arith.constant 0 : i32
    %c0_i32_0 = arith.constant 0 : i32
    return %arg0, %c0_i32 : i32, i32
  }
  func.func @transform_2(%arg0: i32) -> (i32, i32) {
    %c0_i32 = arith.constant 0 : i32
    %c0_i32_0 = arith.constant 0 : i32
    %c0_i32_1 = arith.constant 0 : i32
    return %c0_i32, %c0_i32_0 : i32, i32
  }
  func.func @transform_3(%arg0: i32) -> (i32, i32) {
    %c0_i32 = arith.constant 0 : i32
    %c0_i32_0 = arith.constant 0 : i32
    %c0_i32_1 = arith.constant 0 : i32
    return %c0_i32, %c0_i32_0 : i32, i32
  }
  func.func @transform_4(%arg0: i32) -> (i32, i32) {
    %c0_i32 = arith.constant 0 : i32
    %c0_i32_0 = arith.constant 0 : i32
    %c0_i32_1 = arith.constant 0 : i32
    return %c0_i32, %c0_i32_0 : i32, i32
  }
  func.func @transform_5(%arg0: i32) -> (i32, i32) {
    %c0_i32 = arith.constant 0 : i32
    %c0_i32_0 = arith.constant 0 : i32
    %c0_i32_1 = arith.constant 0 : i32
    return %c0_i32, %c0_i32_0 : i32, i32
  }
  func.func @transform_6(%arg0: i32) -> (i32, i32) {
    %c0_i32 = arith.constant 0 : i32
    %c0_i32_0 = arith.constant 0 : i32
    %c0_i32_1 = arith.constant 0 : i32
    return %c0_i32, %c0_i32_0 : i32, i32
  }
  func.func @transform_7(%arg0: i32) -> (i32, i32) {
    %c0_i32 = arith.constant 0 : i32
    %c0_i32_0 = arith.constant 0 : i32
    %c0_i32_1 = arith.constant 0 : i32
    return %c0_i32, %c0_i32_0 : i32, i32
  }
  func.func @transform_8(%arg0: i32) -> (i32, i32) {
    %c0_i32 = arith.constant 0 : i32
    %c0_i32_0 = arith.constant 0 : i32
    return %arg0, %c0_i32 : i32, i32
  }
}

</mosaic_0001>

<bundles_post_ra>
// kernel: gru_cell_forward.1
= control target key start
LH: loop header
LB: loop body
LE: loop exit
PB: predicated region body
PF: predicated region fallthrough
CT: control target
= control target key end

     0   :  { %13 = vsyncpa [#allocation3], 0  ;;  %s757_s0 = inlined_call_operand.vmem [shape: f32[2,32], index: 0, kind: input, shape index: {}]   ;;  %s758_s1 = inlined_call_operand.vmem [shape: f32[2,6], index: 1, kind: input, shape index: {}]   ;;  %s759_s2 = inlined_call_operand.hbm [shape: f32[32,64], index: 2, kind: input, shape index: {}]   ;;  %s760_s3 = inlined_call_operand.hbm [shape: f32[6,64], index: 3, kind: input, shape index: {}]   ;;  %s761_s4 = inlined_call_operand.vmem [shape: f32[1,64], index: 4, kind: input, shape index: {}]   ;;  %s762_s5 = inlined_call_operand.hbm [shape: f32[32,32], index: 5, kind: input, shape index: {}]   ;;  %s763_s6 = inlined_call_operand.hbm [shape: f32[6,32], index: 6, kind: input, shape index: {}]   ;;  %s764_s7 = inlined_call_operand.hbm [shape: f32[1,32], index: 7, kind: input, shape index: {}]   ;;  %s765_s8 = inlined_call_operand.hbm [shape: f32[2,32], index: 8, kind: output, shape index: {}]  }
   0x1   :  { %14 = vsyncpa [#allocation6], 0 }
   0x2   :  { %15 = vsyncpa [#allocation9], 0 }
   0x3   :  { %16 = vsyncpa [#allocation4], 0  ;;  %s661_s27 = smov [#allocation5]   ;;  %s662_s29 = smov [#allocation8]  }
   0x4   :  { %s39_s28 = sshll.u32 %s661_s27, 4  ;;  %s63_s30 = sshll.u32 %s662_s29, 4  ;;  %s40_s28 = int_to_ptr.vmem [resolvable:$true] %s39_s28  ;;  %s64_s30 = int_to_ptr.vmem [resolvable:$true] %s63_s30 }
   0x5   :  { %s541_s9 = scalar_lea.vmem %s40_s28, 128  ;;  %p546_p1 = scmp.lt.s32.totalorder %s40_s28, %s40_s28 }
   0x6   :  { %p542_p0 = scmp.ne.s32.totalorder %s40_s28, %s541_s9  ;;  %p547_p2 = scmp.lt.s32.totalorder %s541_s9, %s541_s9 }
   0x8   :  { %p548_p3 = por %p547_p2, %p546_p1 }
   0xa   :  { %p549_p4 = pnand %p548_p3, %p542_p0 }
   0xc   :  { %552 = shalt.err (!%p549_p4)
}
   0xd   :  { %42 = dma.hbm_to_vmem [thread:$0]  %s760_s3, 128, %s40_s28, [#allocation6]  }
   0xe   :  { %s561_s12 = scalar_lea.vmem %s64_s30, 128  ;;  %p566_p6 = scmp.lt.s32.totalorder %s64_s30, %s64_s30 }
   0xf   :  { %p562_p5 = scmp.ne.s32.totalorder %s64_s30, %s561_s12  ;;  %p567_p7 = scmp.lt.s32.totalorder %s561_s12, %s561_s12 }
  0x11   :  { %p568_p8 = por %p567_p7, %p566_p6 }
  0x13   :  { %p569_p9 = pnand %p568_p8, %p562_p5 }
  0x15   :  { %572 = shalt.err (!%p569_p9)
}
  0x16   :  { %66 = dma.hbm_to_vmem [thread:$0]  %s763_s6, 128, %s64_s30, [#allocation9]  }
  0x17   :  { %s663_s15 = smov [#allocation2]  }
  0x18   :  { %s26_s16 = sshll.u32 %s663_s15, 4  ;;  %s27_s16 = int_to_ptr.vmem [resolvable:$true] %s26_s16 }
  0x19   :  { %s581_s17 = scalar_lea.vmem %s27_s16, 512  ;;  %p586_p11 = scmp.lt.s32.totalorder %s27_s16, %s27_s16 }
  0x1a   :  { %p582_p10 = scmp.ne.s32.totalorder %s27_s16, %s581_s17  ;;  %p587_p12 = scmp.lt.s32.totalorder %s581_s17, %s581_s17 }
  0x1c   :  { %p588_p13 = por %p587_p12, %p586_p11 }
  0x1e   :  { %p589_p0 = pnand %p588_p13, %p582_p10 }
  0x20   :  { %592 = shalt.err (!%p589_p0)
}
  0x21   :  { %s664_s3 = smov 128   ;;  %s665_s18 = smov 8  }
  0x22   :  { %32 = dma.hbm_to_vmem [thread:$0]  %s759_s2, 512, %s27_s16, [#allocation3], %s664_s3, %s664_s3, %s665_s18  }
  0x23   :  { %s666_s21 = smov [#allocation7]   ;;  %s667_s6 = smov [#allocation10]  }
  0x24   :  { %s50_s22 = sshll.u32 %s666_s21, 4  ;;  %s73_s23 = sshll.u32 %s667_s6, 4  ;;  %s51_s22 = int_to_ptr.vmem [resolvable:$true] %s50_s22  ;;  %s74_s23 = int_to_ptr.vmem [resolvable:$true] %s73_s23 }
  0x25   :  { %s601_s24 = scalar_lea.vmem %s51_s22, 512  ;;  %p606_p2 = scmp.lt.s32.totalorder %s51_s22, %s51_s22 }
  0x26   :  { %p602_p1 = scmp.ne.s32.totalorder %s51_s22, %s601_s24  ;;  %p607_p3 = scmp.lt.s32.totalorder %s601_s24, %s601_s24 }
  0x28   :  { %p608_p4 = por %p607_p3, %p606_p2 }
  0x2a   :  { %p609_p5 = pnand %p608_p4, %p602_p1 }
  0x2c   :  { %612 = shalt.err (!%p609_p5)
}
  0x2d   :  { %56 = dma.hbm_to_vmem [thread:$0]  %s762_s5, 512, %s51_s22, [#allocation6], %s664_s3, %s664_s3, %s665_s18  }
  0x2e   :  { %s621_s27 = scalar_lea.vmem %s74_s23, 16  ;;  %s625_s2 = scalar_lea.vmem %s74_s23, 32 }
  0x2f   :  { %p622_p6 = scmp.ne.s32.totalorder %s74_s23, %s621_s27  ;;  %p626_p7 = scmp.lt.s32.totalorder %s74_s23, %s74_s23 }
  0x30   :  { %p627_p8 = scmp.lt.s32.totalorder %s625_s2, %s621_s27 }
  0x32   :  { %p628_p9 = por %p627_p8, %p626_p7 }
  0x34   :  { %p629_p10 = pnand %p628_p9, %p622_p6 }
  0x36   :  { %632 = shalt.err (!%p629_p10)
}
  0x37   :  { %76 = dma.hbm_to_vmem [thread:$0]  %s764_s7, 16, %s74_s23, [#allocation9]  }
  0x38   :  { %653 = dma.done.wait [#allocation3], 512  }
  0x39   :  { %654 = vsyncadd [#allocation3], 4294966784 }
  0x3a   :  { %655 = dma.done.wait [#allocation6], 640  }
  0x3b   :  { %656 = vsyncadd [#allocation6], 4294966656 }
  0x3c   :  { %657 = dma.done.wait [#allocation9], 144  }
  0x3d   :  { %658 = vsyncadd [#allocation9], 4294967152  ;;  %v668_v0 = vmov 0.0   ;;  %vm669_vm0 = vmmov 0   ;;  %vm103_vm1 = vcmask 1045504   ;;  %vm99_vm2 = vcmask 48128  }
  0x3e   :  { %483 = vmatprep.subr.mxu1 %v668_v0  ;;  %485 = vmatprep.mubr.msk.f32.mxu1 %vm669_vm0, %v668_v0  ;;  %v98_v1 = vld [vmem:[#allocation5] sm:$0x3f]  ;;  %v97_v3 = vld [vmem:[#allocation2 + $0x18] sm:$0xff]  ;;  %v96_v4 = vld [vmem:[#allocation2 + $0x10] sm:$0xff]  ;;  %s670_s10 = smov 32   ;;  %vm177_vm3 = vcmask 261120  }
  0x3f   :  { %499 = vmatprep.subr.mxu0 %v668_v0  ;;  %501 = vmatprep.mubr.msk.f32.mxu0 %vm669_vm0, %v668_v0  ;;  %v93_v2 = vld [vmem:[%s758_s1] sm:$0x3]  ;;  %v95_v6 = vld [vmem:[#allocation2 + $0x8] sm:$0xff]  ;;  %v268_v10 = vld [vmem:[#allocation7 + $0x10] sm:$0xff]  ;;  %s672_s11 = smov [#allocation11]   ;;  %vm441_vm4 = vcmask 254976  }
  0x40   :  { %484 = vmatpush3.msk.msra.mxu1 %vm103_vm1, %v98_v1  ;;  %v92_v5 = vld [vmem:[%s757_s0] sm:$0x3]  ;;  %v270_v8 = vld [vmem:[#allocation8] sm:$0x3f]  ;;  %v267_v11 = vld [vmem:[#allocation7 + $0x8] sm:$0xff]  ;;  %s449_s12 = sshll.u32 %s672_s11, 4  ;;  %s450_s12 = int_to_ptr.vmem [resolvable:$true] %s449_s12 }
  0x41   :  { %486 = vmatmul.mubr.msk.f32.vlgmr.msra.gmra.mxu1 %vm99_vm2, %v93_v2  ;;  %488 = vmatprep.subr.mxu1 %v668_v0  ;;  %v94_v7 = vld [vmem:[#allocation2] sm:$0xff]  ;;  %v266_v12 = vld [vmem:[#allocation7] sm:$0xff]  ;;  %v468_v28 = vld [vmem:[#allocation10] ss:$0 sm:$0xff]  ;;  %s633_s13 = scalar_lea.vmem %s450_s12, 32  ;;  %p638_p12 = scmp.lt.s32.totalorder %s450_s12, %s450_s12 }
  0x42   :  { %489 = vmatpush3.msra.mxu1 %v97_v3  ;;  %496 = vmatprep.mubr.msk.f32.mxu1 %vm669_vm0, %v668_v0  ;;  %v269_v9 = vld [vmem:[#allocation7 + $0x18] sm:$0xff]  ;;  %p634_p11 = scmp.ne.s32.totalorder %s450_s12, %s633_s13  ;;  %p639_p13 = scmp.lt.s32.totalorder %s633_s13, %s633_s13 }
  0x43   :  { %490 = vmatprep.subr.mxu1 %v668_v0  ;;  %426 = vrot.lane.b32.xlu0 %v92_v5, %s670_s10  ;;  %v463_v16 = vld [vmem:[%s761_s4] ss:$0 sm:$0xff]  ;;  %s671_s4 = smov 96  }
  0x44   :  { %491 = vmatpush3.msra.mxu1 %v96_v4  ;;  %500 = vmatpush3.msk.msra.mxu0 %vm103_vm1, %v270_v8  ;;  %p640_p0 = por %p639_p13, %p638_p12 }
  0x45   :  { %492 = vmatprep.subr.mxu1 %v668_v0  ;;  %502 = vmatmul.mubr.msk.f32.vlgmr.msra.gmra.mxu0 %vm99_vm2, %v93_v2 }
  0x46   :  { %493 = vmatpush3.msra.mxu1 %v95_v6  ;;  %504 = vmatprep.subr.mxu0 %v668_v0  ;;  %p641_p1 = pnand %p640_p0, %p634_p11 }
  0x47   :  { %494 = vmatprep.subr.mxu1 %v668_v0  ;;  %505 = vmatpush3.msra.mxu0 %v269_v9 }
  0x48   :  { %495 = vmatpush3.msra.mxu1 %v94_v7  ;;  %512 = vmatprep.mubr.msk.f32.mxu0 %vm669_vm0, %v668_v0 }
  0x49   :  { %497 = vmatmul.mubr.msk.f32.vlgmr.msra.gmra.mxu1 %vm177_vm3, %v92_v5  ;;  %506 = vmatprep.subr.mxu0 %v668_v0 }
  0x4a   :  { %507 = vmatpush3.msra.mxu0 %v268_v10 }
  0x4b   :  { %508 = vmatprep.subr.mxu0 %v668_v0 }
  0x4c   :  { %509 = vmatpush3.msra.mxu0 %v267_v11 }
  0x4d   :  { %510 = vmatprep.subr.mxu0 %v668_v0 }
  0x4e   :  { %511 = vmatpush3.msra.mxu0 %v266_v12 }
  0xb5   :  { %v427_v33 = vpop.permute.xlu0 %426 }
 0x101   :  { %v173_v13 = vpop.f32.mrf.mxu1 }
 0x103   :  { %v487_v14 = vpop.f32.mrf.mxu1 }
 0x105   :  { %v340_v25 = vpop.f32.mrf.mxu0 }
 0x107   :  { %v503_v26 = vpop.f32.mrf.mxu0 }
 0x109   :  { %v247_v15 = vpop.f32.mrf.mxu1 }
 0x10a   :  { %v248_v17 = vadd.f32 %v247_v15, %v173_v13 }
 0x10b   :  { %v498_v18 = vpop.f32.mrf.mxu1 }
 0x10c   :  { %v258_v19 = vadd.f32 %v463_v16, %v248_v17 }
 0x10e   :  { %v464_v20 = vmul.f32 -1.442695, %v258_v19 }
 0x110   :  { %527 = vpow2.f32 %v464_v20 }
 0x11d   :  { %v528_v21 = vpop.eup %527 }
 0x11e   :  { %v262_v22 = vadd.f32 1.0, %v528_v21 }
 0x120   :  { %529 = vrcp.f32 %v262_v22 }
 0x12d   :  { %v530_v23 = vpop.eup %529 }
 0x12e   :  { %v265_v24 = vmul.f32 %v530_v23, %v92_v5  ;;  %v430_v34 = vsub.f32 1.0, %v530_v23  ;;  %v429_v36 = vmul.f32 %v530_v23, %v427_v33 }
 0x130   :  { %513 = vmatmul.mubr.msk.f32.vlgmr.msra.gmra.mxu0 %vm177_vm3, %v265_v24 }
 0x1f0   :  { %v413_v27 = vpop.f32.mrf.mxu0 }
 0x1f1   :  { %v414_v29 = vadd.f32 %v413_v27, %v340_v25 }
 0x1f2   :  { %v514_v30 = vpop.f32.mrf.mxu0 }
 0x1f3   :  { %v424_v31 = vadd.f32 %v468_v28, %v414_v29 }
 0x1f5   :  { %531 = vtanh.f32 %v424_v31 }
 0x202   :  { %v532_v32 = vpop.eup %531 }
 0x203   :  { %432 = vrot.lane.b32.xlu0 %v532_v32, %s670_s10 }
 0x275   :  { %v433_v35 = vpop.permute.xlu0 %432 }
 0x276   :  { %v435_v37 = vmul.f32 %v433_v35, %v430_v34 }
 0x278   :  { %v436_v38 = vadd.f32 %v435_v37, %v429_v36 }
 0x27a   :  { %438 = vrot.lane.b32.xlu1 %v436_v38, %s671_s4 }
 0x2ec   :  { %v439_v39 = vpop.permute.xlu1 %438 }
 0x2ed   :  { %442 = vst.msk [vmem:[#allocation11] sm:$0x3] %vm441_vm4, %v439_v39 }
 0x2ee   :  { %644 = shalt.err (!%p641_p1)
}
 0x2ef   :  { %452 = dma.vmem_to_hbm [thread:$0]  %s450_s12, 32, %s765_s8, [#allocation4]  }
 0x2f0   :  { %659 = dma.done.wait [#allocation4], 32  }
 0x2f1   :  { %660 = vsyncadd [#allocation4], 4294967264 }
 0x2f2   :  { %456 = vsyncpa [#allocation3], 1 }
 0x2f3   :  { %457 = vsyncpa [#allocation6], 1 }
 0x2f4   :  { %458 = vsyncpa [#allocation9], 1 }
 0x2f5   :  { %459 = vsyncpa [#allocation4], 1 }

</bundles_post_ra>
